<compile_context>
chip_gen: v7x
topology: tpu7x:2x2x1
jax: 0.10.0
libtpu: 0.0.40
codegen_flags: <defaults>
</compile_context>

<pallas_src>
import jax
import jax.numpy as jnp
from jax.experimental import pallas as pl
from jax.experimental.pallas import tpu as pltpu


# ---------------------------------------------------------------------------
# Path 1: full-map streaming + flat VPU gather (small / medium maps).
# ---------------------------------------------------------------------------
def _make_fullmap_kernel(pin_chunk):
    def kernel(yt_ref, yp_ref, idx_ref, out_ref):
        # yt_ref : (bt, N, 1)  f32  targets, pin index on sublanes
        # yp_ref : (bt, 1, HW) pred dtype (f32 or bf16; NOT upcast here)
        # idx_ref: (bt, N, 1)  i32  flattened pin index row*W + col
        # out_ref: (1, 8, 128) f32  lane-dense per-block partial-sum slab
        yp = yp_ref[...]
        yt = yt_ref[...]
        idx = idx_ref[...]
        bt, _, hw = yp.shape
        n = yt.shape[1]

        hw_iota = jax.lax.broadcasted_iota(jnp.int32, (bt, 1, hw), 2)
        zero = jnp.zeros((), dtype=yp.dtype)
        total = jnp.float32(0.0)

        # Chunk the pins so the (bt, nc, HW) select intermediate stays bounded.
        for j0 in range(0, n, pin_chunk):
            nc = min(pin_chunk, n - j0)
            idx_c = idx[:, j0:j0 + nc, :]                    # (bt, nc, 1)
            sel = jnp.where(hw_iota == idx_c, yp, zero)      # (bt, nc, hw)
            # Exactly one nonzero per (b, pin) row -> native-dtype sum is exact
            # even in bf16; promote only the gathered scalar.
            gathered = jnp.sum(sel, axis=-1, keepdims=True).astype(jnp.float32)
            diff = yt[:, j0:j0 + nc, :] - gathered           # (bt, nc, 1) f32
            total = total + jnp.sum(diff * diff)

        ri = jax.lax.broadcasted_iota(jnp.int32, (1, 8, 128), 1)
        li = jax.lax.broadcasted_iota(jnp.int32, (1, 8, 128), 2)
        out_ref[...] = jnp.where((ri == 0) & (li == 0), total, 0.0)

    return kernel


def _npp_identity_fullmap(y_true, y_pred_hw, pins, *, pred_dtype,
                          block_budget_bytes, pin_chunk):
    B, N = y_true.shape
    _, H, W = y_pred_hw.shape
    HW = H * W
    itemsize = jnp.dtype(pred_dtype).itemsize

    yp = y_pred_hw.astype(pred_dtype).reshape(B, 1, HW)
    yt = y_true.astype(jnp.float32).reshape(B, N, 1)
    idx = (pins[..., 0].astype(jnp.int32) * W
           + pins[..., 1].astype(jnp.int32)).reshape(B, N, 1)

    # ---- batch-tile sizing: double-buffered blocks + in-kernel intermediates.
    nc = max(1, min(pin_chunk, N))

    def per_img_bytes(nc_):
        return (2 * HW * itemsize               # double-buffered y_pred block
                + nc_ * HW * (itemsize + 1)     # where-select + mask
                + HW * 4                        # iota
                + 4 * N * 8)                    # yt / idx blocks (x2 buffers)

    while nc > 1 and per_img_bytes(nc) > block_budget_bytes:
        nc //= 2

    bt_cap = max(1, int(block_budget_bytes // per_img_bytes(nc)))
    if B >= 2:
        # >= 2 grid blocks -> the "parallel" axis can shard across v7x's 2 TCs.
        bt_cap = min(bt_cap, -(-B // 2))
    # bt must divide B exactly -> no padding copy of y_pred is ever made.
    bt = max(d for d in range(1, B + 1) if B % d == 0 and d <= max(1, bt_cap))
    num_blocks = B // bt

    vmem_limit = int(min(48 * 1024 * 1024,
                         max(32 * 1024 * 1024, 2 * bt * per_img_bytes(nc))))

    out = pl.pallas_call(
        _make_fullmap_kernel(nc),
        out_shape=jax.ShapeDtypeStruct((num_blocks, 8, 128), jnp.float32),
        grid_spec=pltpu.PrefetchScalarGridSpec(
            num_scalar_prefetch=0,
            grid=(num_blocks,),
            in_specs=[
                pl.BlockSpec((bt, N, 1), lambda g: (g, 0, 0)),    # y_true
                pl.BlockSpec((bt, 1, HW), lambda g: (g, 0, 0)),   # y_pred maps
                pl.BlockSpec((bt, N, 1), lambda g: (g, 0, 0)),    # flat pin idx
            ],
            out_specs=pl.BlockSpec((1, 8, 128), lambda g: (g, 0, 0)),
        ),
        compiler_params=pltpu.CompilerParams(
            dimension_semantics=("parallel",),
            vmem_limit_bytes=vmem_limit,
        ),
    )(yt, yp, idx)

    return jnp.sum(out) / jnp.float32(N * B)


# ---------------------------------------------------------------------------
# Path 2: scalar-prefetched row gather via manual per-row DMA (tall maps).
# Reads only B*N*W*item bytes of y_pred instead of B*H*W*item.
# ---------------------------------------------------------------------------
def _make_rowgather_kernel(n_pins, h):
    def kernel(rows_smem, yt_ref, cols_ref, yp_hbm, out_ref, buf, sems):
        # rows_smem: (B*N,) i32 in SMEM (scalar prefetch) -> DMA row addresses
        # yt_ref   : (1, N, 1) f32        cols_ref: (1, N, 1) i32
        # yp_hbm   : (B*H, W) in HBM (pl.ANY)
        # out_ref  : (1, 8, 128) f32      buf: (N, W) VMEM   sems: DMA (N,)
        b = pl.program_id(0)

        @pl.loop(0, n_pins)
        def _start(j):
            r = rows_smem[b * n_pins + j]
            pltpu.make_async_copy(yp_hbm.at[b * h + r], buf.at[j],
                                  sems.at[j]).start()

        @pl.loop(0, n_pins)
        def _wait(j):
            pltpu.make_async_copy(yp_hbm.at[0], buf.at[j], sems.at[j]).wait()

        picked = buf[...]                                      # (N, W)
        w = picked.shape[-1]
        lane_iota = jax.lax.broadcasted_iota(jnp.int32, (n_pins, w), 1)
        cols = cols_ref[0]                                     # (N, 1)
        sel = jnp.where(lane_iota == cols, picked,
                        jnp.zeros((), picked.dtype))           # (N, W)
        gathered = jnp.sum(sel, axis=-1, keepdims=True).astype(jnp.float32)
        diff = yt_ref[0] - gathered                            # (N, 1)
        total = jnp.sum(diff * diff)

        ri = jax.lax.broadcasted_iota(jnp.int32, (1, 8, 128), 1)
        li = jax.lax.broadcasted_iota(jnp.int32, (1, 8, 128), 2)
        out_ref[...] = jnp.where((ri == 0) & (li == 0), total, 0.0)

    return kernel


def _npp_identity_rowgather(y_true, y_pred_hw, pins, *, pred_dtype):
    B, N = y_true.shape
    _, H, W = y_pred_hw.shape

    yp_flat = y_pred_hw.astype(pred_dtype).reshape(B * H, W)   # row-indexable
    yt = y_true.astype(jnp.float32).reshape(B, N, 1)
    rows = pins[..., 0].astype(jnp.int32).reshape(B * N)       # -> SMEM
    cols = pins[..., 1].astype(jnp.int32).reshape(B, N, 1)

    out = pl.pallas_call(
        _make_rowgather_kernel(N, H),
        out_shape=jax.ShapeDtypeStruct((B, 8, 128), jnp.float32),
        grid_spec=pltpu.PrefetchScalarGridSpec(
            num_scalar_prefetch=1,                 # pin rows drive the DMAs
            grid=(B,),
            in_specs=[
                pl.BlockSpec((1, N, 1), lambda b, rows_ref: (b, 0, 0)),  # y_true
                pl.BlockSpec((1, N, 1), lambda b, rows_ref: (b, 0, 0)),  # cols
                pl.BlockSpec(memory_space=pl.ANY),                       # y_pred
            ],
            out_specs=pl.BlockSpec((1, 8, 128), lambda b, rows_ref: (b, 0, 0)),
            scratch_shapes=[
                pltpu.VMEM((N, W), pred_dtype),    # gathered pin rows
                pltpu.SemaphoreType.DMA((N,)),
            ],
        ),
        compiler_params=pltpu.CompilerParams(
            dimension_semantics=("parallel",),
            vmem_limit_bytes=32 * 1024 * 1024,
        ),
    )(rows, yt, cols, yp_flat)

    return jnp.sum(out) / jnp.float32(N * B)


# ---------------------------------------------------------------------------
# Public identity-branch entry point.
# ---------------------------------------------------------------------------
def npp_loss_identity(y_true, y_pred, pins, *,
                      block_budget_bytes=8 * 1024 * 1024,
                      cast_pred_to_bf16=False,
                      pin_chunk=8):
    """Pallas implementation of NPPLoss(identity=True).forward.

    y_true: (B, N) float     targets at the pin locations
    y_pred: (B, 1, H, W) or (B, H, W) float  predictions (NCHW, C=1)
    pins:   (B, N, 2) int    (row, col) coordinates into the HxW map

    NOTE: out-of-range pins gather 0.0 (full-map path) or fault (row-gather
    path) instead of raising like torch advanced indexing; inputs must be valid.
    """
    if y_pred.ndim == 4:
        y_pred = jnp.squeeze(y_pred, axis=1)   # matches y_pred[i].squeeze(), C=1
    B, N = y_true.shape
    _, H, W = y_pred.shape

    # bf16 storage halves the dominant y_pred HBM read; default off to keep
    # exact float32 forward semantics.
    pred_dtype = jnp.bfloat16 if cast_pred_to_bf16 else jnp.float32

    # Row gather pays off only when few map rows are touched (H >> N) and the
    # per-row DMA is not comically small; otherwise streaming the full map is
    # both simpler and faster (per-step/ per-DMA overhead dominates tiny maps).
    use_row_gather = (H >= 8 * N) and (W >= 128)
    if use_row_gather:
        return _npp_identity_rowgather(y_true, y_pred, pins,
                                       pred_dtype=pred_dtype)
    return _npp_identity_fullmap(y_true, y_pred, pins, pred_dtype=pred_dtype,
                                 block_budget_bytes=block_budget_bytes,
                                 pin_chunk=pin_chunk)


# ---------------------------------------------------------------------------
# Non-identity branch (plain JAX).
# ---------------------------------------------------------------------------
def npp_loss_general(y_true, y_pred, pins, kernel_fn, kernel_params, noise=0.0):
    # TODO(synk): torch.linalg.pinv / torch.logdet have no Pallas equivalent;
    # this branch stays in XLA (jnp.linalg), only the identity branch is a kernel.
    if y_pred.ndim == 4:
        y_pred = jnp.squeeze(y_pred, axis=1)
    B, N = y_true.shape
    loss = jnp.float32(0.0)
    for i in range(B):
        gathered = y_pred[i][pins[i, :, 0], pins[i, :, 1]]
        diff = y_true[i] - gathered
        kp = None if kernel_params is None else kernel_params[i]
        K = kernel_fn(pins[i].astype(jnp.float32), pins[i].astype(jnp.float32), kp)
        Kn = K + noise * jnp.eye(N, dtype=K.dtype)
        pinv = jnp.linalg.pinv(Kn)
        _, logabsdet = jnp.linalg.slogdet(Kn)
        loss += (diff @ (pinv @ diff) + logabsdet) / N
    return loss / B


class NPPLoss:
    def __init__(self, identity, kernel=None, noise=0.0):
        self.identity = identity
        self.kernel = kernel
        self.noise = noise

    def __call__(self, y_true, y_pred, pins, kernel_params=None):
        if self.identity:
            return npp_loss_identity(y_true, y_pred, pins)
        return npp_loss_general(y_true, y_pred, pins, self.kernel,
                                kernel_params, self.noise)


def _reference_identity_loss(y_true, y_pred, pins):
    yp_sq = jnp.squeeze(y_pred, axis=1)
    B, N = y_true.shape
    ref = jnp.float32(0.0)
    for i in range(B):
        g = yp_sq[i][pins[i, :, 0], pins[i, :, 1]]
        d = y_true[i] - g
        ref += jnp.dot(d, d) / N
    return ref / B


if __name__ == "__main__":
    key = jax.random.PRNGKey(0)
    loss_fn = NPPLoss(identity=True, kernel=None)

    # ---- Test 1: spec shapes (small map) -> full-map / flat-gather path ----
    B, N, H, W = 2, 8, 16, 16
    k1, k2, k3, k4 = jax.random.split(key, 4)
    y_true = jax.random.normal(k1, (B, N), dtype=jnp.float32)
    y_pred = jax.random.normal(k2, (B, 1, H, W), dtype=jnp.float32)   # NCHW, C=1
    rows = jax.random.randint(k3, (B, N, 1), 0, H)
    cols = jax.random.randint(k4, (B, N, 1), 0, W)
    pins = jnp.concatenate([rows, cols], axis=-1).astype(jnp.int32)

    loss1 = jax.block_until_ready(loss_fn(y_true, y_pred, pins))
    ref1 = _reference_identity_loss(y_true, y_pred, pins)
    assert jnp.allclose(loss1, ref1, atol=1e-5, rtol=1e-5), (loss1, ref1)

    # ---- Test 2: tall map -> scalar-prefetched row-gather (manual DMA) path ----
    B2, N2, H2, W2 = 2, 8, 256, 128
    k5, k6, k7, k8 = jax.random.split(jax.random.PRNGKey(1), 4)
    y_true2 = jax.random.normal(k5, (B2, N2), dtype=jnp.float32)
    y_pred2 = jax.random.normal(k6, (B2, 1, H2, W2), dtype=jnp.float32)
    rows2 = jax.random.randint(k7, (B2, N2, 1), 0, H2)
    cols2 = jax.random.randint(k8, (B2, N2, 1), 0, W2)
    pins2 = jnp.concatenate([rows2, cols2], axis=-1).astype(jnp.int32)

    loss2 = jax.block_until_ready(loss_fn(y_true2, y_pred2, pins2))
    ref2 = _reference_identity_loss(y_true2, y_pred2, pins2)
    assert jnp.allclose(loss2, ref2, atol=1e-5, rtol=1e-5), (loss2, ref2)

    print("KERNEL_OK")
</pallas_src>

<mosaic_0001>
module attributes {stable_mosaic.version = 11 : i64} {
  func.func @kernel(%arg0: i32, %arg1: memref<1x8x1xf32, #tpu.memory_space<vmem>>, %arg2: memref<1x1x256xf32, #tpu.memory_space<vmem>>, %arg3: memref<1x8x1xi32, #tpu.memory_space<vmem>>, %arg4: memref<1x8x128xf32, #tpu.memory_space<vmem>>) attributes {dimension_semantics = [#tpu.dimension_semantics<parallel>], iteration_bounds = array<i64: 2>, scalar_prefetch = 0 : i64, scratch_operands = 0 : i64, tpu.core_type = #tpu.core_type<tc>, window_params = [{transform_indices = @transform_0, window_bounds = array<i64: 1, 8, 1>}, {transform_indices = @transform_1, window_bounds = array<i64: 1, 1, 256>}, {transform_indices = @transform_2, window_bounds = array<i64: 1, 8, 1>}, {transform_indices = @transform_3, window_bounds = array<i64: 1, 8, 128>}]} {
    %c0 = arith.constant 0 : index
    %c0_0 = arith.constant 0 : index
    %c0_1 = arith.constant 0 : index
    %0 = vector.load %arg2[%c0, %c0_0, %c0_1] : memref<1x1x256xf32, #tpu.memory_space<vmem>>, vector<1x1x256xf32>
    %c0_2 = arith.constant 0 : index
    %c0_3 = arith.constant 0 : index
    %c0_4 = arith.constant 0 : index
    %1 = vector.load %arg1[%c0_2, %c0_3, %c0_4] : memref<1x8x1xf32, #tpu.memory_space<vmem>>, vector<1x8x1xf32>
    %c0_5 = arith.constant 0 : index
    %c0_6 = arith.constant 0 : index
    %c0_7 = arith.constant 0 : index
    %2 = vector.load %arg3[%c0_5, %c0_6, %c0_7] : memref<1x8x1xi32, #tpu.memory_space<vmem>>, vector<1x8x1xi32>
    %3 = tpu.iota {dimensions = array<i32: 2>} : vector<1x1x256xi32>
    %4 = vector.broadcast %3 : vector<1x1x256xi32> to vector<1x8x256xi32>
    %5 = vector.broadcast %2 : vector<1x8x1xi32> to vector<1x8x256xi32>
    %6 = arith.cmpi eq, %4, %5 : vector<1x8x256xi32>
    %cst = arith.constant 0.000000e+00 : f32
    %7 = vector.shape_cast %0 : vector<1x1x256xf32> to vector<1x1x256xf32>
    %8 = vector.broadcast %7 : vector<1x1x256xf32> to vector<1x8x256xf32>
    %9 = vector.broadcast %cst : f32 to vector<1x8x256xf32>
    %10 = arith.select %6, %8, %9 : vector<1x8x256xi1>, vector<1x8x256xf32>
    %cst_8 = arith.constant dense<0.000000e+00> : vector<1x8xf32>
    %11 = vector.multi_reduction <add>, %10, %cst_8 [2] : vector<1x8x256xf32> to vector<1x8xf32>
    %12 = vector.shape_cast %11 : vector<1x8xf32> to vector<1x8x1xf32>
    %13 = arith.subf %1, %12 : vector<1x8x1xf32>
    %14 = arith.mulf %13, %13 : vector<1x8x1xf32>
    %15 = vector.shape_cast %14 : vector<1x8x1xf32> to vector<1x1x8x1xf32>
    %cst_9 = arith.constant dense<0.000000e+00> : vector<1xf32>
    %16 = vector.multi_reduction <add>, %15, %cst_9 [1, 2, 3] : vector<1x1x8x1xf32> to vector<1xf32>
    %17 = vector.shape_cast %16 : vector<1xf32> to vector<1x1x1x1xf32>
    %18 = vector.extract %17[0, 0, 0, 0] : f32 from vector<1x1x1x1xf32>
    %cst_10 = arith.constant 0.000000e+00 : f32
    %19 = arith.addf %cst_10, %18 : f32
    %20 = tpu.iota {dimensions = array<i32: 1>} : vector<1x8x128xi32>
    %21 = tpu.iota {dimensions = array<i32: 2>} : vector<1x8x128xi32>
    %c0_i32 = arith.constant 0 : i32
    %22 = vector.broadcast %c0_i32 : i32 to vector<1x8x128xi32>
    %23 = arith.cmpi eq, %20, %22 : vector<1x8x128xi32>
    %c0_i32_11 = arith.constant 0 : i32
    %24 = vector.broadcast %c0_i32_11 : i32 to vector<1x8x128xi32>
    %25 = arith.cmpi eq, %21, %24 : vector<1x8x128xi32>
    %26 = arith.andi %23, %25 : vector<1x8x128xi1>
    %cst_12 = arith.constant 0.000000e+00 : f32
    %27 = vector.broadcast %19 : f32 to vector<1x8x128xf32>
    %28 = vector.broadcast %cst_12 : f32 to vector<1x8x128xf32>
    %29 = arith.select %26, %27, %28 : vector<1x8x128xi1>, vector<1x8x128xf32>
    %c0_13 = arith.constant 0 : index
    %c0_14 = arith.constant 0 : index
    %c0_15 = arith.constant 0 : index
    %30 = vector.load %arg4[%c0_13, %c0_14, %c0_15] : memref<1x8x128xf32, #tpu.memory_space<vmem>>, vector<1x8x128xf32>
    tpu.vector_store %arg4[%c0_13, %c0_14, %c0_15], %29 {strides = array<i32>} : memref<1x8x128xf32, #tpu.memory_space<vmem>>, vector<1x8x128xf32>,
    return
  }
  func.func @transform_0(%arg0: i32) -> (i32, i32, i32) {
    %c0_i32 = arith.constant 0 : i32
    %c0_i32_0 = arith.constant 0 : i32
    %c0_i32_1 = arith.constant 0 : i32
    return %arg0, %c0_i32, %c0_i32_0 : i32, i32, i32
  }
  func.func @transform_1(%arg0: i32) -> (i32, i32, i32) {
    %c0_i32 = arith.constant 0 : i32
    %c0_i32_0 = arith.constant 0 : i32
    %c0_i32_1 = arith.constant 0 : i32
    return %arg0, %c0_i32, %c0_i32_0 : i32, i32, i32
  }
  func.func @transform_2(%arg0: i32) -> (i32, i32, i32) {
    %c0_i32 = arith.constant 0 : i32
    %c0_i32_0 = arith.constant 0 : i32
    %c0_i32_1 = arith.constant 0 : i32
    return %arg0, %c0_i32, %c0_i32_0 : i32, i32, i32
  }
  func.func @transform_3(%arg0: i32) -> (i32, i32, i32) {
    %c0_i32 = arith.constant 0 : i32
    %c0_i32_0 = arith.constant 0 : i32
    %c0_i32_1 = arith.constant 0 : i32
    return %arg0, %c0_i32, %c0_i32_0 : i32, i32, i32
  }
}

</mosaic_0001>

<bundles_post_ra>
// kernel: tpu_custom_call.1
= control target key start
LH: loop header
LB: loop body
LE: loop exit
PB: predicated region body
PF: predicated region fallthrough
CT: control target
= control target key end

     0   :  { %8 = vsyncpa [#allocation3], 0  ;;  %s593_s0 = inlined_call_operand.vmem [shape: f32[2,8,1], index: 0, kind: input, shape index: {}]   ;;  %s594_s1 = inlined_call_operand.vmem [shape: f32[2,1,256], index: 1, kind: input, shape index: {}]   ;;  %s595_s2 = inlined_call_operand.vmem [shape: s32[2,8,1], index: 2, kind: input, shape index: {}]   ;;  %s596_s3 = inlined_call_operand.hbm [shape: f32[2,8,128], index: 3, kind: output, shape index: {}]  }
   0x1   :  { %10 = vsyncpa [#allocation3 + $0x1], 0  ;;  %s487_s12 = smov 0   ;;  %s489_s13 = smov 0  }
   0x2   :  { %s491_s14 = smov 0   ;;  %s493_s15 = smov 0  }
   0x3 LB: > { %s508_s16 = sadd.s32 4294967295, %s463_s15   ;;  %s346_s17 = sadd.s32 4294967294, %s463_s15   ;;  %s463_s15 = sphi %s493_s15, %s602_s15   ;;  %s459_s14 = sphi %s491_s14, %s601_s14   ;;  %s455_s13 = sphi %s489_s13, %s600_s13   ;;  %s451_s12 = sphi %s487_s12, %s599_s12  }
   0x4   : > { %s512_s18 = sadd.s32 1, %s463_s15   ;;  %s101_s19 = sadd.s32 1, %s459_s14 }
   0x5   : > { %s98_s20 = ssub.s32 %s463_s15, %s512_s18  ;;  %p111_p0 = scmp.ne.s32.totalorder %s459_s14, %s455_s13 }
   0x6   : > { %p99_p1 = scmp.eq.s32.totalorder %s98_s20, 0  ;;  %p112_p2 = scmp.eq.s32.totalorder %s508_s16, 1 }
   0x7   : > { %p117_p3 = scmp.ne.s32.totalorder %s455_s13, %s451_s12  ;;  %p118_p4 = scmp.eq.s32.totalorder %s346_s17, 1 }
   0x8   : > { %s523_s21 = scalar_select %p99_p1, %s459_s14, %s101_s19  }
   0x9   : > { %p525_p5 = por %p112_p2, %p111_p0  ;;  %p529_p6 = por %p118_p4, %p117_p3 }
   0xa   : > { %p349_p7 = scmp.ge.s32.totalorder %s463_s15, 1  ;;  %p157_p8 = scmp.lt.s32.totalorder %s463_s15, 3 }
   0xc   : > { %p158_p9 = pnand %p349_p7, %p157_p8 }
   0xd   : > { %p188_p10 = scmp.lt.s32.totalorder (!%p158_p9), %s508_s16, 1  ;;  %v465_v0 = vmov (!%p158_p9), 0   ;;  %v203_v2 = vlaneseq (!%p158_p9)  ;;  %vm229_vm2 = vcmask (!%p158_p9), 7168   ;;  %s185_s9 = sand.u32 (!%p158_p9), 1, %s455_s13  }
   0xe   : > { %161 = sbr.rel (%p158_p9) target bundleno = 525 (0x20d), region = 32  ;;  %400 = vset.pattern.permute.xlu0 (!%p158_p9), %v465_v0  ;;  %s350_s10 = sshll.u32 (!%p158_p9), %s185_s9, 3 }
   0xf   : > { %v213_v3 = vshrl.u32 (!%p158_p9), %v203_v2, 7  ;;  %v204_v4 = vand.u32 (!%p158_p9), 127, %v203_v2  ;;  %s355_s11 = sshll.u32 (!%p158_p9), %s508_s16, 7  ;;  %s187_s17 = scalar_lea.vmem (!%p158_p9), [#allocation2], %s350_s10 }
  0x10   : > { %s263_s19 = sshll.u32 (!%p158_p9), %s187_s17, 4  ;;  %s551_s26 = scalar_lea.hbm (!%p158_p9), %s596_s3, %s355_s11  ;;  %s553_s19 = int_to_ptr.vmem [resolvable:$true] %s263_s19 }
  0x11   : > { %v214_v5 = vsub.s32 (!%p158_p9), 0, %v213_v3  ;;  %v218_v6 = vsub.s32 (!%p158_p9), 1, %v213_v3  ;;  %v205_v8 = vadd.s32 (!%p158_p9), 128, %v204_v4  ;;  %vm243_vm3 = vcmp.eq.s32.totalorder (!%p158_p9), %v213_v3, 0  ;;  %s250_s27 = scalar_lea.sflag (!%p158_p9), [#allocation3], %s185_s9 }
  0x12   : > { %vm244_vm4 = vcmp.eq.s32.totalorder (!%p158_p9), %v204_v4, 0 }
  0x13   : > { %vm245_vm5 = vmand (!%p158_p9), %vm243_vm3, %vm244_vm4 }
  0x15   : > { %s189_s24 = scalar_select %p188_p10, %s508_s16, 1 }
  0x16   : > { %s466_s16 = smov [#allocation2]  }
  0x17   : > { %s351_s25 = sshll.u32 %s189_s24, 3  ;;  %s352_s29 = sshll.u32 %s189_s24, 1 }
  0x18   : > { %s199_s28 = scalar_lea.vmem %s595_s2, %s351_s25  ;;  %s195_s5 = scalar_lea.vmem %s594_s1, %s352_s29 }
  0x19   : > { %v202_v1 = vld [vmem:[%s199_s28] sm:$0xff]  ;;  %s191_s8 = scalar_lea.vmem %s593_s0, %s351_s25  ;;  %s401_s28 = scalar_lea.vmem %s553_s19, 128 }
  0x1a   : > { %207 = vperm.xlu0 %400, %v202_v1   ;;  %v200_v7 = vld [vmem:[%s195_s5] sm:$0x3]  ;;  %p402_p11 = scmp.ne.s32.totalorder %s553_s19, %s401_s28  ;;  %s405_s29 = sshll.u32 %s466_s16, 4  ;;  %s406_s29 = int_to_ptr.vmem [resolvable:$false] %s405_s29 }
  0x1b   : > { %v215_v9 = vrot.slane %v200_v7, %v214_v5  ;;  %v219_v10 = vrot.slane %v200_v7, %v218_v6  ;;  %v201_v15 = vld [vmem:[%s191_s8] sm:$0xff]  ;;  %s407_s30 = scalar_lea.vmem %s406_s29, 256  ;;  %p408_p0 = scmp.lt.s32.totalorder %s553_s19, %s406_s29 }
  0x1c   : > { %p403_p12 = pnand %p402_p11, %p525_p5  ;;  %p409_p1 = scmp.lt.s32.totalorder %s407_s30, %s401_s28 }
  0x1e   : > { %p404_p13 = pneg %p403_p12  ;;  %p410_p2 = por %p409_p1, %p408_p0 }
  0x20   : > { %p411_p3 = pnand %p410_p2, %p404_p13 }
  0x99   : > { %v208_v11 = vpop.permute.xlu0 %207 }
  0x9a   : > { %vm209_vm0 = vcmp.eq.s32.totalorder %v204_v4, %v208_v11  ;;  %vm210_vm1 = vcmp.eq.s32.totalorder %v205_v8, %v208_v11 }
  0x9b   : > { %v222_v12 = vsel %vm209_vm0, %v215_v9, 0.0  ;;  %v223_v13 = vsel %vm210_vm1, %v219_v10, 0.0 }
  0x9c   : > { %v224_v14 = vadd.f32 %v223_v13, %v222_v12 }
  0x9e   : > { %225 = vadd.xlane.f32.xlu0 %v224_v14 }
 0x12b   : > { %v226_v16 = vpop.xlane.xlu0 %225 }
 0x12c   : > { %v227_v17 = vsub.f32 %v201_v15, %v226_v16 }
 0x12e   : > { %v228_v18 = vmul.f32 %v227_v17, %v227_v17 }
 0x130   : > { %v230_v19 = vsel %vm229_vm2, %v228_v18, 0.0 }
 0x131   : > { %231 = vadd.xlane.f32.xlu1 %v230_v19 }
 0x1be   : > { %v232_v20 = vpop.xlane.xlu1 %231 }
 0x1bf   : > { %v233_v21 = vrot.slane %v232_v20, 4 }
 0x1c1   : > { %v234_v22 = vadd.f32 %v233_v21, %v232_v20 }
 0x1c3   : > { %v235_v23 = vrot.slane %v234_v22, 2 }
 0x1c5   : > { %v236_v24 = vadd.f32 %v235_v23, %v234_v22 }
 0x1c7   : > { %v237_v25 = vrot.slane %v236_v24, 1 }
 0x1c9   : > { %v238_v26 = vadd.f32 %v237_v25, %v236_v24 }
 0x1cb   : > { %358 = vpush %v238_v26 }
 0x1fc   : > { %s359_s20 = spop %358 }
 0x1fd   : > { %v246_v27 = vstv %s359_s20 }
 0x1fe   : > { %v247_v28 = vsel %vm245_vm5, %v246_v27, 0.0 }
 0x1ff   : > { %248 = vst [vmem:[%s187_s17] sm:$0xff] %v247_v28 }
 0x200   : > { %414 = shalt.err (!%p411_p3)
}
 0x201   : > { %s415_s4 = scalar_lea.hbm %s551_s26, 128  ;;  %s419_s7 = scalar_lea.hbm %s596_s3, 256 }
 0x202   : > { %p416_p4 = scmp.ne.s32.totalorder %s551_s26, %s415_s4  ;;  %p420_p9 = scmp.lt.u32.totalorder %s551_s26, %s596_s3 }
 0x203   : > { %p421_p10 = scmp.lt.u32.totalorder %s419_s7, %s415_s4  ;;  %p423_p12 = scmp.lt.u32.totalorder %s415_s4, %s551_s26 }
 0x204   : > { %p417_p7 = pnand %p416_p4, %p525_p5 }
 0x205   : > { %p422_p11 = por %p421_p10, %p420_p9 }
 0x206   : > { %p418_p8 = pneg %p417_p7 }
 0x207   : > { %p424_p13 = por %p423_p12, %p422_p11 }
 0x209   : > { %p425_p0 = pnand %p424_p13, %p418_p8 }
 0x20b   : > { %428 = shalt.err (!%p425_p0)
}
 0x20c   : > { %360 = dma.vmem_to_hbm [thread:$0]  (%p525_p5), %s553_s19, 128, %s551_s26, %s250_s27  }
 0x20d PF: > { %p366_p1 = scmp.ge.s32.totalorder %s463_s15, 2  ;;  %s275_s10 = sand.u32 1, %s451_s12  }
 0x20e   : > { %s276_s11 = scalar_lea.sflag [#allocation3], %s275_s10 }
 0x20f   : > { %p363_p2 = pnand %p366_p1, %p529_p6 }
 0x211   : > { %446 = dma.done.wait (!%p363_p2), %s276_s11, 128  }
 0x212   : > { %448 = vsyncadd (!%p363_p2), %s276_s11, 4294967168  ;;  %p13_p3 = scmp.ge.s32.totalorder %s512_s18, 4   ;;  %s599_s12 = smov %s455_s13 }
 0x213   : > { %s600_s13 = smov %s459_s14  ;;  %s601_s14 = smov %s523_s21 }
 0x214   : > { %s602_s15 = smov %s512_s18  ;;  %15 = sbr.rel (!%p13_p3) target bundleno = 3 (0x3), region = 73 }
 0x21b   :  { %281 = vsyncpa [#allocation3], 1 }
 0x21c   :  { %283 = vsyncpa [#allocation3 + $0x1], 1 }

</bundles_post_ra>
